<compile_context>
chip_gen: v6e
topology: v6e:2x2x1
jax: 0.10.0
libtpu: 0.0.40
codegen_flags: <defaults>
</compile_context>

<pallas_src>
import jax
import jax.numpy as jnp
from jax.experimental import pallas as pl
from jax.experimental.pallas import tpu as pltpu

# ----------------------------- hparams --------------------------------------
LATENT_DIM = 32
MAX_NODES = 8
NUM_NODE_FEAT = 4
NUM_EDGE_FEAT = 3
NUM_PROPS = 2                       # len(hparams['properties'])
PROP_HIDDEN = 67                    # prop_net_hidden_dim default
PROP_PAD = 128                      # PROP_HIDDEN zero-padded to dense lanes
PROP_Z = LATENT_DIM                 # property_latent_dim defaults to latent_dim
ENC_HIDDEN = 64
DEC_HIDDEN = 64
PRELU_ALPHA = 0.25                  # nn.PReLU() default init
BN_EPS = 1e-5

T_ADJ = MAX_NODES * (MAX_NODES + 1) // 2            # 36 upper-tri (incl. diag)
N_EDGE = MAX_NODES * (MAX_NODES - 1) // 2           # 28 upper-tri (off-diag)
ENC_IN = MAX_NODES * NUM_NODE_FEAT + T_ADJ          # 68
DEC_OUT = T_ADJ + MAX_NODES * NUM_NODE_FEAT + N_EDGE * NUM_EDGE_FEAT  # 152

FUSE_H = DEC_HIDDEN + PROP_PAD                      # 192 fused trunk width
FUSE_OUT = DEC_OUT + 2 * NUM_PROPS                  # 156 fused head width

# logical packed output: [dec(152) | mu(32) | sigma(32) | y_mu(2) | y_sigma(2)]
LOGICAL_W = DEC_OUT + 2 * LATENT_DIM + 2 * NUM_PROPS        # 220
OUT_W = 256                                         # padded -> unmasked stores
PACK_W = FUSE_H                                     # widest bias row (192)
MAX_TILE_B = 1024


# ----------------------------- kernel ----------------------------------------
def graph_vae_kernel(
    x_ref, noise_ref,
    ew1, ew2, ewh,                  # encoder weights (bf16)
    fw1, fw2, fw3,                  # fused decoder+property weights (bf16)
    bias_ref,                       # (6, 192) f32 packed biases
    out_ref,                        # (tile_b, 256) f32
):
    f32 = jnp.float32
    bf16 = jnp.bfloat16
    bp = bias_ref[...]

    def row(i, width):              # (1, width) bias row
        return bp[i:i + 1, :width]

    # ---- Encoder (MLP stand-in): fused mu/log_sigma head ----
    x = x_ref[...]                  # already bf16
    h = jnp.dot(x, ew1[...], preferred_element_type=f32) + row(0, ENC_HIDDEN)
    h = jnp.maximum(h, 0.0)
    h = jnp.dot(h.astype(bf16), ew2[...], preferred_element_type=f32) + row(1, ENC_HIDDEN)
    h = jnp.maximum(h, 0.0)
    head = jnp.dot(h.astype(bf16), ewh[...], preferred_element_type=f32) + row(2, 2 * LATENT_DIM)
    mu = head[:, :LATENT_DIM]
    log_sigma = jnp.clip(head[:, LATENT_DIM:], -30.0, 20.0)
    sigma = jnp.exp(log_sigma)

    # ---- Reparameterization: z = eps * sigma + mu (f32) ----
    z = noise_ref[...] * sigma + mu

    # ---- Fused decoder + property-predictor trunk ----
    # cols [0, DEC_HIDDEN): decoder (ReLU == PReLU alpha=0)
    # cols [DEC_HIDDEN, FUSE_H): property predictor (BN folded, PReLU alpha=0.25)
    col = jax.lax.broadcasted_iota(jnp.int32, (1, FUSE_H), 1)
    alpha = jnp.where(col < DEC_HIDDEN, 0.0, PRELU_ALPHA)

    t = jnp.dot(z.astype(bf16), fw1[...], preferred_element_type=f32) + row(3, FUSE_H)
    t = jnp.where(t >= 0.0, t, alpha * t)
    t = jnp.dot(t.astype(bf16), fw2[...], preferred_element_type=f32) + row(4, FUSE_H)
    t = jnp.where(t >= 0.0, t, alpha * t)
    o3 = jnp.dot(t.astype(bf16), fw3[...], preferred_element_type=f32) + row(5, FUSE_OUT)

    dec = o3[:, :DEC_OUT]                                   # (tb, 152)
    y_mu = o3[:, DEC_OUT:DEC_OUT + NUM_PROPS]               # (tb, 2)
    y_log_sigma = o3[:, DEC_OUT + NUM_PROPS:FUSE_OUT]       # (tb, 2)
    y_sigma = jnp.exp(jnp.clip(y_log_sigma, -20.0, 30.0))   # exp only on sigma cols

    # ---- single lane-dense (256-wide, unmasked) store ----
    pad = jnp.zeros((dec.shape[0], OUT_W - LOGICAL_W), f32)
    out_ref[...] = jnp.concatenate([dec, mu, sigma, y_mu, y_sigma, pad], axis=-1)


# ----------------------------- wrapper ----------------------------------------
def _round_up(x, m):
    return (x + m - 1) // m * m


def _cdiv(a, b):
    return (a + b - 1) // b


def _choose_tiling(B):
    """tile_b multiple of 8; grid divides evenly; >=2 steps once b_pad >= 16."""
    b8 = _round_up(max(B, 1), 8)
    n_steps = max(_cdiv(b8, MAX_TILE_B), 2 if b8 >= 16 else 1)
    tile_b = _round_up(_cdiv(b8, n_steps), 8)
    b_pad = tile_b * n_steps
    return tile_b, b_pad, n_steps


@jax.jit
def graph_vae_forward(x_in, noise, params):
    B = x_in.shape[0]
    tile_b, b_pad, n_steps = _choose_tiling(B)
    if b_pad != B:
        x_in = jnp.pad(x_in, ((0, b_pad - B), (0, 0)))
        noise = jnp.pad(noise, ((0, b_pad - B), (0, 0)))
    # x is only consumed by the MXU in bf16 -> halve its HBM read traffic.
    x_in = x_in.astype(jnp.bfloat16)
    noise = noise.astype(jnp.float32)
    weights, bias_pack = params[:-1], params[-1]

    def resident(a):
        # full-array block, constant index map -> fetched once, VMEM-resident
        return pl.BlockSpec(a.shape, lambda i: (0, 0))

    in_specs = (
        [pl.BlockSpec((tile_b, ENC_IN), lambda i: (i, 0)),
         pl.BlockSpec((tile_b, LATENT_DIM), lambda i: (i, 0))]
        + [resident(w) for w in weights]
        + [resident(bias_pack)]
    )
    out_specs = pl.BlockSpec((tile_b, OUT_W), lambda i: (i, 0))

    fused = pl.pallas_call(
        graph_vae_kernel,
        out_shape=jax.ShapeDtypeStruct((b_pad, OUT_W), jnp.float32),
        grid=(n_steps,),
        in_specs=in_specs,
        out_specs=out_specs,
        compiler_params=pltpu.CompilerParams(
            dimension_semantics=("parallel",)),
    )(x_in, noise, *weights, bias_pack)

    fused = fused[:B]
    dec = fused[:, :DEC_OUT]
    mu = fused[:, DEC_OUT:DEC_OUT + LATENT_DIM]
    sigma = fused[:, DEC_OUT + LATENT_DIM:DEC_OUT + 2 * LATENT_DIM]
    y_mu = fused[:, DEC_OUT + 2 * LATENT_DIM:DEC_OUT + 2 * LATENT_DIM + NUM_PROPS]
    y_sigma = fused[:, DEC_OUT + 2 * LATENT_DIM + NUM_PROPS:LOGICAL_W]

    n_node_flat = MAX_NODES * NUM_NODE_FEAT
    adj = dec[:, :T_ADJ]
    node_mat = dec[:, T_ADJ:T_ADJ + n_node_flat].reshape(B, MAX_NODES, NUM_NODE_FEAT)
    edge_mat = dec[:, T_ADJ + n_node_flat:].reshape(B, N_EDGE, NUM_EDGE_FEAT)
    return (adj, node_mat, edge_mat), mu, sigma, y_mu, y_sigma


# ----------------------------- params ----------------------------------------
def _linear(key, fan_in, fan_out):
    # nn.Linear-style uniform(-1/sqrt(fan_in), 1/sqrt(fan_in))
    kw, kb = jax.random.split(key)
    bound = 1.0 / float(fan_in) ** 0.5
    w = jax.random.uniform(kw, (fan_in, fan_out), jnp.float32, -bound, bound)
    b = jax.random.uniform(kb, (fan_out,), jnp.float32, -bound, bound)
    return w, b


def _fold_bn(w, b, gamma, beta, mean, var):
    # BN(eval)(Wx + b) == (W * s) x + (b * s + beta - mean * s), s = gamma/sqrt(var+eps)
    # NOTE: if real running stats are loaded later, re-run this fold outside the kernel.
    s = gamma / jnp.sqrt(var + BN_EPS)
    return w * s[None, :], b * s + (beta - mean * s)


def _block_diag(a, b):
    top = jnp.concatenate([a, jnp.zeros((a.shape[0], b.shape[1]), a.dtype)], axis=1)
    bot = jnp.concatenate([jnp.zeros((b.shape[0], a.shape[1]), b.dtype), b], axis=1)
    return jnp.concatenate([top, bot], axis=0)


def _pad_row(b):
    return jnp.pad(b, (0, PACK_W - b.shape[0]))


def init_params(key):
    ks = jax.random.split(key, 10)
    # encoder (MLP stand-in for the torch_geometric GNN encoder)
    ew1, eb1 = _linear(ks[0], ENC_IN, ENC_HIDDEN)
    ew2, eb2 = _linear(ks[1], ENC_HIDDEN, ENC_HIDDEN)
    ewmu, ebmu = _linear(ks[2], ENC_HIDDEN, LATENT_DIM)
    ewls, ebls = _linear(ks[3], ENC_HIDDEN, LATENT_DIM)
    # decoder
    dw1, db1 = _linear(ks[4], LATENT_DIM, DEC_HIDDEN)
    dw2, db2 = _linear(ks[5], DEC_HIDDEN, DEC_HIDDEN)
    dw3, db3 = _linear(ks[6], DEC_HIDDEN, DEC_OUT)
    # property predictor
    pw1, pb1 = _linear(ks[7], PROP_Z, PROP_HIDDEN)
    pw2, pb2 = _linear(ks[8], PROP_HIDDEN, PROP_HIDDEN)
    pw3, pb3 = _linear(ks[9], PROP_HIDDEN, NUM_PROPS * 2)

    # BatchNorm1d (eval mode, fresh stats: gamma=1, beta=0, mean=0, var=1) folded
    # exactly into the preceding Linear layers.  Dropout == identity in eval.
    ones = jnp.ones((PROP_HIDDEN,), jnp.float32)
    zeros = jnp.zeros((PROP_HIDDEN,), jnp.float32)
    pw1, pb1 = _fold_bn(pw1, pb1, ones, zeros, zeros, ones)
    pw2, pb2 = _fold_bn(pw2, pb2, ones, zeros, zeros, ones)

    # zero-pad PROP_HIDDEN (67 -> 128) for dense lanes / clean K=128 MXU passes;
    # padded columns stay exactly 0 through PReLU so results are unchanged.
    pw1p = jnp.pad(pw1, ((0, 0), (0, PROP_PAD - PROP_HIDDEN)))
    pb1p = jnp.pad(pb1, (0, PROP_PAD - PROP_HIDDEN))
    pw2p = jnp.pad(pw2, ((0, PROP_PAD - PROP_HIDDEN), (0, PROP_PAD - PROP_HIDDEN)))
    pb2p = jnp.pad(pb2, (0, PROP_PAD - PROP_HIDDEN))
    pw3p = jnp.pad(pw3, ((0, PROP_PAD - PROP_HIDDEN), (0, 0)))

    # fuse the mu / log_sigma heads into one matmul
    ewh = jnp.concatenate([ewmu, ewls], axis=1)
    ebh = jnp.concatenate([ebmu, ebls], axis=0)

    # fuse decoder + property-predictor trunks (both consume z) into three
    # block-diagonal matmuls: (32,192), (192,192), (192,156).
    fw1 = jnp.concatenate([dw1, pw1p], axis=1)
    fb1 = jnp.concatenate([db1, pb1p], axis=0)
    fw2 = _block_diag(dw2, pw2p)
    fb2 = jnp.concatenate([db2, pb2p], axis=0)
    fw3 = _block_diag(dw3, pw3p)
    fb3 = jnp.concatenate([db3, pb3], axis=0)

    # one stacked, lane-padded bias array: (6, 192) f32
    bias_pack = jnp.stack(
        [_pad_row(eb1), _pad_row(eb2), _pad_row(ebh),
         _pad_row(fb1), _pad_row(fb2), _pad_row(fb3)], axis=0)

    bf16 = jnp.bfloat16
    weights = tuple(w.astype(bf16) for w in (ew1, ew2, ewh, fw1, fw2, fw3))
    return weights + (bias_pack,)


# ----------------------------- main -------------------------------------------
if __name__ == "__main__":
    key = jax.random.PRNGKey(0)
    k_param, k_x, k_noise = jax.random.split(key, 3)

    B = 2
    params = init_params(k_param)
    # synthetic dense graph representation fed to the (MLP) encoder:
    # flattened node-feature matrix + upper-triangular adjacency.
    x_in = jax.random.normal(k_x, (B, ENC_IN), jnp.float32)
    # reparameterization noise (torch.randn_like(mu) equivalent)
    noise = jax.random.normal(k_noise, (B, LATENT_DIM), jnp.float32)

    (adj, node_mat, edge_mat), mu, sigma, y_mu, y_sigma = graph_vae_forward(
        x_in, noise, params
    )
    jax.block_until_ready((adj, node_mat, edge_mat, mu, sigma, y_mu, y_sigma))

    assert adj.shape == (B, T_ADJ)
    assert node_mat.shape == (B, MAX_NODES, NUM_NODE_FEAT)
    assert edge_mat.shape == (B, N_EDGE, NUM_EDGE_FEAT)
    assert mu.shape == (B, LATENT_DIM) and sigma.shape == (B, LATENT_DIM)
    assert y_mu.shape == (B, NUM_PROPS) and y_sigma.shape == (B, NUM_PROPS)
    assert bool(jnp.all(sigma > 0)) and bool(jnp.all(y_sigma > 0))
    assert bool(jnp.all(jnp.isfinite(adj)))
    assert bool(jnp.all(jnp.isfinite(node_mat))) and bool(jnp.all(jnp.isfinite(edge_mat)))

    print("KERNEL_OK")
</pallas_src>

<mosaic_0001>
module attributes {stable_mosaic.version = 11 : i64} {
  func.func @graph_vae_kernel(%arg0: i32, %arg1: memref<8x68xbf16, #tpu.memory_space<vmem>>, %arg2: memref<8x32xf32, #tpu.memory_space<vmem>>, %arg3: memref<68x64xbf16, #tpu.memory_space<vmem>>, %arg4: memref<64x64xbf16, #tpu.memory_space<vmem>>, %arg5: memref<64x64xbf16, #tpu.memory_space<vmem>>, %arg6: memref<32x192xbf16, #tpu.memory_space<vmem>>, %arg7: memref<192x192xbf16, #tpu.memory_space<vmem>>, %arg8: memref<192x156xbf16, #tpu.memory_space<vmem>>, %arg9: memref<6x192xf32, #tpu.memory_space<vmem>>, %arg10: memref<8x256xf32, #tpu.memory_space<vmem>>) attributes {dimension_semantics = [#tpu.dimension_semantics<parallel>], iteration_bounds = array<i64: 1>, scalar_prefetch = 0 : i64, scratch_operands = 0 : i64, tpu.core_type = #tpu.core_type<tc>, window_params = [{transform_indices = @transform_0, window_bounds = array<i64: 8, 68>}, {transform_indices = @transform_1, window_bounds = array<i64: 8, 32>}, {pipeline_mode = #tpu.pipeline_mode<synchronous>, transform_indices = @transform_2, window_bounds = array<i64: 68, 64>}, {pipeline_mode = #tpu.pipeline_mode<synchronous>, transform_indices = @transform_3, window_bounds = array<i64: 64, 64>}, {pipeline_mode = #tpu.pipeline_mode<synchronous>, transform_indices = @transform_4, window_bounds = array<i64: 64, 64>}, {pipeline_mode = #tpu.pipeline_mode<synchronous>, transform_indices = @transform_5, window_bounds = array<i64: 32, 192>}, {pipeline_mode = #tpu.pipeline_mode<synchronous>, transform_indices = @transform_6, window_bounds = array<i64: 192, 192>}, {pipeline_mode = #tpu.pipeline_mode<synchronous>, transform_indices = @transform_7, window_bounds = array<i64: 192, 156>}, {pipeline_mode = #tpu.pipeline_mode<synchronous>, transform_indices = @transform_8, window_bounds = array<i64: 6, 192>}, {transform_indices = @transform_9, window_bounds = array<i64: 8, 256>}]} {
    %c0 = arith.constant 0 : index
    %c0_0 = arith.constant 0 : index
    %0 = vector.load %arg9[%c0, %c0_0] : memref<6x192xf32, #tpu.memory_space<vmem>>, vector<6x192xf32>
    %c0_1 = arith.constant 0 : index
    %c0_2 = arith.constant 0 : index
    %1 = vector.load %arg1[%c0_1, %c0_2] : memref<8x68xbf16, #tpu.memory_space<vmem>>, vector<8x68xbf16>
    %c0_3 = arith.constant 0 : index
    %c0_4 = arith.constant 0 : index
    %2 = vector.load %arg3[%c0_3, %c0_4] : memref<68x64xbf16, #tpu.memory_space<vmem>>, vector<68x64xbf16>
    %cst = arith.constant dense<0.000000e+00> : vector<8x64xf32>
    %3 = tpu.matmul %1, %2, %cst {dimension_numbers = #tpu.dot_dimension_numbers<[1], [0], [0], [1], [0, 0, 1, 1], [], []>} : vector<8x68xbf16>, vector<68x64xbf16>, vector<8x64xf32> -> vector<8x64xf32>
    %4 = vector.extract_strided_slice %0 {offsets = [0, 0], sizes = [1, 64], strides = [1, 1]} : vector<6x192xf32> to vector<1x64xf32>
    %5 = vector.broadcast %4 : vector<1x64xf32> to vector<8x64xf32>
    %6 = arith.addf %3, %5 : vector<8x64xf32>
    %cst_5 = arith.constant 0.000000e+00 : f32
    %7 = vector.broadcast %cst_5 : f32 to vector<8x64xf32>
    %8 = arith.maximumf %6, %7 : vector<8x64xf32>
    %9 = arith.truncf %8 : vector<8x64xf32> to vector<8x64xbf16>
    %c0_6 = arith.constant 0 : index
    %c0_7 = arith.constant 0 : index
    %10 = vector.load %arg4[%c0_6, %c0_7] : memref<64x64xbf16, #tpu.memory_space<vmem>>, vector<64x64xbf16>
    %cst_8 = arith.constant dense<0.000000e+00> : vector<8x64xf32>
    %11 = tpu.matmul %9, %10, %cst_8 {dimension_numbers = #tpu.dot_dimension_numbers<[1], [0], [0], [1], [0, 0, 1, 1], [], []>} : vector<8x64xbf16>, vector<64x64xbf16>, vector<8x64xf32> -> vector<8x64xf32>
    %12 = vector.extract_strided_slice %0 {offsets = [1, 0], sizes = [1, 64], strides = [1, 1]} : vector<6x192xf32> to vector<1x64xf32>
    %13 = vector.broadcast %12 : vector<1x64xf32> to vector<8x64xf32>
    %14 = arith.addf %11, %13 : vector<8x64xf32>
    %cst_9 = arith.constant 0.000000e+00 : f32
    %15 = vector.broadcast %cst_9 : f32 to vector<8x64xf32>
    %16 = arith.maximumf %14, %15 : vector<8x64xf32>
    %17 = arith.truncf %16 : vector<8x64xf32> to vector<8x64xbf16>
    %c0_10 = arith.constant 0 : index
    %c0_11 = arith.constant 0 : index
    %18 = vector.load %arg5[%c0_10, %c0_11] : memref<64x64xbf16, #tpu.memory_space<vmem>>, vector<64x64xbf16>
    %cst_12 = arith.constant dense<0.000000e+00> : vector<8x64xf32>
    %19 = tpu.matmul %17, %18, %cst_12 {dimension_numbers = #tpu.dot_dimension_numbers<[1], [0], [0], [1], [0, 0, 1, 1], [], []>} : vector<8x64xbf16>, vector<64x64xbf16>, vector<8x64xf32> -> vector<8x64xf32>
    %20 = vector.extract_strided_slice %0 {offsets = [2, 0], sizes = [1, 64], strides = [1, 1]} : vector<6x192xf32> to vector<1x64xf32>
    %21 = vector.broadcast %20 : vector<1x64xf32> to vector<8x64xf32>
    %22 = arith.addf %19, %21 : vector<8x64xf32>
    %23 = vector.extract_strided_slice %22 {offsets = [0, 0], sizes = [8, 32], strides = [1, 1]} : vector<8x64xf32> to vector<8x32xf32>
    %24 = vector.extract_strided_slice %22 {offsets = [0, 32], sizes = [8, 32], strides = [1, 1]} : vector<8x64xf32> to vector<8x32xf32>
    %cst_13 = arith.constant -3.000000e+01 : f32
    %cst_14 = arith.constant 2.000000e+01 : f32
    %25 = vector.broadcast %cst_13 : f32 to vector<8x32xf32>
    %26 = arith.maximumf %25, %24 : vector<8x32xf32>
    %27 = vector.broadcast %cst_14 : f32 to vector<8x32xf32>
    %28 = arith.minimumf %27, %26 : vector<8x32xf32>
    %29 = math.exp %28 : vector<8x32xf32>
    %c0_15 = arith.constant 0 : index
    %c0_16 = arith.constant 0 : index
    %30 = vector.load %arg2[%c0_15, %c0_16] : memref<8x32xf32, #tpu.memory_space<vmem>>, vector<8x32xf32>
    %31 = arith.mulf %30, %29 : vector<8x32xf32>
    %32 = arith.addf %31, %23 : vector<8x32xf32>
    %33 = tpu.iota {dimensions = array<i32: 1>} : vector<1x192xi32>
    %c64_i32 = arith.constant 64 : i32
    %34 = vector.broadcast %c64_i32 : i32 to vector<1x192xi32>
    %35 = arith.cmpi slt, %33, %34 : vector<1x192xi32>
    %cst_17 = arith.constant 0.000000e+00 : f32
    %cst_18 = arith.constant 2.500000e-01 : f32
    %36 = vector.broadcast %cst_17 : f32 to vector<1x192xf32>
    %37 = vector.broadcast %cst_18 : f32 to vector<1x192xf32>
    %38 = arith.select %35, %36, %37 : vector<1x192xi1>, vector<1x192xf32>
    %39 = arith.truncf %32 : vector<8x32xf32> to vector<8x32xbf16>
    %c0_19 = arith.constant 0 : index
    %c0_20 = arith.constant 0 : index
    %40 = vector.load %arg6[%c0_19, %c0_20] : memref<32x192xbf16, #tpu.memory_space<vmem>>, vector<32x192xbf16>
    %cst_21 = arith.constant dense<0.000000e+00> : vector<8x192xf32>
    %41 = tpu.matmul %39, %40, %cst_21 {dimension_numbers = #tpu.dot_dimension_numbers<[1], [0], [0], [1], [0, 0, 1, 1], [], []>} : vector<8x32xbf16>, vector<32x192xbf16>, vector<8x192xf32> -> vector<8x192xf32>
    %42 = vector.extract_strided_slice %0 {offsets = [3, 0], sizes = [1, 192], strides = [1, 1]} : vector<6x192xf32> to vector<1x192xf32>
    %43 = vector.broadcast %42 : vector<1x192xf32> to vector<8x192xf32>
    %44 = arith.addf %41, %43 : vector<8x192xf32>
    %cst_22 = arith.constant 0.000000e+00 : f32
    %45 = vector.broadcast %cst_22 : f32 to vector<8x192xf32>
    %46 = arith.cmpf oge, %44, %45 : vector<8x192xf32>
    %47 = vector.broadcast %38 : vector<1x192xf32> to vector<8x192xf32>
    %48 = arith.mulf %47, %44 : vector<8x192xf32>
    %49 = arith.select %46, %44, %48 : vector<8x192xi1>, vector<8x192xf32>
    %50 = arith.truncf %49 : vector<8x192xf32> to vector<8x192xbf16>
    %c0_23 = arith.constant 0 : index
    %c0_24 = arith.constant 0 : index
    %51 = vector.load %arg7[%c0_23, %c0_24] : memref<192x192xbf16, #tpu.memory_space<vmem>>, vector<192x192xbf16>
    %cst_25 = arith.constant dense<0.000000e+00> : vector<8x192xf32>
    %52 = tpu.matmul %50, %51, %cst_25 {dimension_numbers = #tpu.dot_dimension_numbers<[1], [0], [0], [1], [0, 0, 1, 1], [], []>} : vector<8x192xbf16>, vector<192x192xbf16>, vector<8x192xf32> -> vector<8x192xf32>
    %53 = vector.extract_strided_slice %0 {offsets = [4, 0], sizes = [1, 192], strides = [1, 1]} : vector<6x192xf32> to vector<1x192xf32>
    %54 = vector.broadcast %53 : vector<1x192xf32> to vector<8x192xf32>
    %55 = arith.addf %52, %54 : vector<8x192xf32>
    %cst_26 = arith.constant 0.000000e+00 : f32
    %56 = vector.broadcast %cst_26 : f32 to vector<8x192xf32>
    %57 = arith.cmpf oge, %55, %56 : vector<8x192xf32>
    %58 = vector.broadcast %38 : vector<1x192xf32> to vector<8x192xf32>
    %59 = arith.mulf %58, %55 : vector<8x192xf32>
    %60 = arith.select %57, %55, %59 : vector<8x192xi1>, vector<8x192xf32>
    %61 = arith.truncf %60 : vector<8x192xf32> to vector<8x192xbf16>
    %c0_27 = arith.constant 0 : index
    %c0_28 = arith.constant 0 : index
    %62 = vector.load %arg8[%c0_27, %c0_28] : memref<192x156xbf16, #tpu.memory_space<vmem>>, vector<192x156xbf16>
    %cst_29 = arith.constant dense<0.000000e+00> : vector<8x156xf32>
    %63 = tpu.matmul %61, %62, %cst_29 {dimension_numbers = #tpu.dot_dimension_numbers<[1], [0], [0], [1], [0, 0, 1, 1], [], []>} : vector<8x192xbf16>, vector<192x156xbf16>, vector<8x156xf32> -> vector<8x156xf32>
    %64 = vector.extract_strided_slice %0 {offsets = [5, 0], sizes = [1, 156], strides = [1, 1]} : vector<6x192xf32> to vector<1x156xf32>
    %65 = vector.broadcast %64 : vector<1x156xf32> to vector<8x156xf32>
    %66 = arith.addf %63, %65 : vector<8x156xf32>
    %67 = vector.extract_strided_slice %66 {offsets = [0, 0], sizes = [8, 152], strides = [1, 1]} : vector<8x156xf32> to vector<8x152xf32>
    %68 = vector.extract_strided_slice %66 {offsets = [0, 152], sizes = [8, 2], strides = [1, 1]} : vector<8x156xf32> to vector<8x2xf32>
    %69 = vector.extract_strided_slice %66 {offsets = [0, 154], sizes = [8, 2], strides = [1, 1]} : vector<8x156xf32> to vector<8x2xf32>
    %cst_30 = arith.constant -2.000000e+01 : f32
    %cst_31 = arith.constant 3.000000e+01 : f32
    %70 = vector.broadcast %cst_30 : f32 to vector<8x2xf32>
    %71 = arith.maximumf %70, %69 : vector<8x2xf32>
    %72 = vector.broadcast %cst_31 : f32 to vector<8x2xf32>
    %73 = arith.minimumf %72, %71 : vector<8x2xf32>
    %74 = math.exp %73 : vector<8x2xf32>
    %cst_32 = arith.constant 0.000000e+00 : f32
    %75 = vector.broadcast %cst_32 : f32 to vector<8x36xf32>
    %76 = tpu.concatenate %67, %23, %29, %68, %74, %75 in 1 : vector<8x152xf32>, vector<8x32xf32>, vector<8x32xf32>, vector<8x2xf32>, vector<8x2xf32>, vector<8x36xf32> -> vector<8x256xf32>
    %c0_33 = arith.constant 0 : index
    %c0_34 = arith.constant 0 : index
    %77 = vector.load %arg10[%c0_33, %c0_34] : memref<8x256xf32, #tpu.memory_space<vmem>>, vector<8x256xf32>
    tpu.vector_store %arg10[%c0_33, %c0_34], %76 {strides = array<i32>} : memref<8x256xf32, #tpu.memory_space<vmem>>, vector<8x256xf32>,
    return
  }
  func.func @transform_0(%arg0: i32) -> (i32, i32) {
    %c0_i32 = arith.constant 0 : i32
    %c0_i32_0 = arith.constant 0 : i32
    return %arg0, %c0_i32 : i32, i32
  }
  func.func @transform_1(%arg0: i32) -> (i32, i32) {
    %c0_i32 = arith.constant 0 : i32
    %c0_i32_0 = arith.constant 0 : i32
    return %arg0, %c0_i32 : i32, i32
  }
  func.func @transform_2(%arg0: i32) -> (i32, i32) {
    %c0_i32 = arith.constant 0 : i32
    %c0_i32_0 = arith.constant 0 : i32
    %c0_i32_1 = arith.constant 0 : i32
    return %c0_i32, %c0_i32_0 : i32, i32
  }
  func.func @transform_3(%arg0: i32) -> (i32, i32) {
    %c0_i32 = arith.constant 0 : i32
    %c0_i32_0 = arith.constant 0 : i32
    %c0_i32_1 = arith.constant 0 : i32
    return %c0_i32, %c0_i32_0 : i32, i32
  }
  func.func @transform_4(%arg0: i32) -> (i32, i32) {
    %c0_i32 = arith.constant 0 : i32
    %c0_i32_0 = arith.constant 0 : i32
    %c0_i32_1 = arith.constant 0 : i32
    return %c0_i32, %c0_i32_0 : i32, i32
  }
  func.func @transform_5(%arg0: i32) -> (i32, i32) {
    %c0_i32 = arith.constant 0 : i32
    %c0_i32_0 = arith.constant 0 : i32
    %c0_i32_1 = arith.constant 0 : i32
    return %c0_i32, %c0_i32_0 : i32, i32
  }
  func.func @transform_6(%arg0: i32) -> (i32, i32) {
    %c0_i32 = arith.constant 0 : i32
    %c0_i32_0 = arith.constant 0 : i32
    %c0_i32_1 = arith.constant 0 : i32
    return %c0_i32, %c0_i32_0 : i32, i32
  }
  func.func @transform_7(%arg0: i32) -> (i32, i32) {
    %c0_i32 = arith.constant 0 : i32
    %c0_i32_0 = arith.constant 0 : i32
    %c0_i32_1 = arith.constant 0 : i32
    return %c0_i32, %c0_i32_0 : i32, i32
  }
  func.func @transform_8(%arg0: i32) -> (i32, i32) {
    %c0_i32 = arith.constant 0 : i32
    %c0_i32_0 = arith.constant 0 : i32
    %c0_i32_1 = arith.constant 0 : i32
    return %c0_i32, %c0_i32_0 : i32, i32
  }
  func.func @transform_9(%arg0: i32) -> (i32, i32) {
    %c0_i32 = arith.constant 0 : i32
    %c0_i32_0 = arith.constant 0 : i32
    return %arg0, %c0_i32 : i32, i32
  }
}

</mosaic_0001>

<bundles_post_ra>
// kernel: graph_vae_forward.1
= control target key start
LH: loop header
LB: loop body
LE: loop exit
PB: predicated region body
PF: predicated region fallthrough
CT: control target
= control target key end

     0   :  { %vm80_vm0 = vcmask 1041408   ;;  %v1053_v0 = vmov 0.0   ;;  %vm1054_vm1 = vmmov 0   ;;  %vm76_vm2 = vcmask 556032   ;;  %s1056_s24 = smov 24   ;;  %s1057_s25 = smov 96   ;;  %s1348_s2 = inlined_call_operand.vmem [shape: bf16[68,64], index: 2, kind: input, shape index: {}]   ;;  %s1349_s3 = inlined_call_operand.vmem [shape: bf16[64,64], index: 3, kind: input, shape index: {}]   ;;  %s1350_s0 = inlined_call_operand.vmem [shape: bf16[8,68], index: 0, kind: input, shape index: {}]   ;;  %s1351_s4 = inlined_call_operand.vmem [shape: bf16[64,64], index: 4, kind: input, shape index: {}]   ;;  %s1352_s8 = inlined_call_operand.vmem [shape: f32[6,192], index: 8, kind: input, shape index: {}]   ;;  %s1353_s5 = inlined_call_operand.vmem [shape: bf16[32,192], index: 5, kind: input, shape index: {}]   ;;  %s1354_s6 = inlined_call_operand.vmem [shape: bf16[192,192], index: 6, kind: input, shape index: {}]   ;;  %s1355_s1 = inlined_call_operand.vmem [shape: f32[8,32], index: 1, kind: input, shape index: {}]   ;;  %s1356_s7 = inlined_call_operand.vmem [shape: bf16[192,156], index: 7, kind: input, shape index: {}]   ;;  %s1357_s9 = inlined_call_operand.vmem [shape: f32[8,256], index: 9, kind: output, shape index: {}]  }
   0x1   :  { %913 = vmatprep.subr.bf16.mxu0 %v1053_v0  ;;  %v958_v1 = vld [vmem:[%s1348_s2 + $0x20] ss:$0 sps:$4 sm:$0x33]   ;;  %923 = vmatprep.mubr.msk.bf16.mxu0 %vm1054_vm1, %v1053_v0  ;;  %v959_v3 = vld [vmem:[%s1348_s2 + $0x18] sm:$0xff]   ;;  %v960_v5 = vld [vmem:[%s1348_s2 + $0x10] sm:$0xff]   ;;  %v45_v12 = vlaneseq  ;;  %vm162_vm3 = vcmask 523264  }
   0x2   :  { %927 = vmatprep.subr.bf16.mxu1 %v1053_v0  ;;  %935 = vmatprep.mubr.msk.bf16.mxu1 %vm1054_vm1, %v1053_v0  ;;  %v82_v2 = vsel %vm80_vm0, %v958_v1, 0  ;;  %v963_v4 = vld [vmem:[%s1349_s3 + $0x18] sm:$0xff]   ;;  %v964_v6 = vld [vmem:[%s1349_s3 + $0x10] sm:$0xff]   ;;  %v961_v7 = vld [vmem:[%s1348_s2 + $0x8] sm:$0xff]   ;;  %v1055_v51 = vmov 0   ;;  %vm338_vm4 = vcmask 261120  }
   0x3   :  { %914 = vmatpush3.bf16.msra.mxu0 %v82_v2  ;;  %928 = vmatpush3.bf16.msra.mxu1 %v963_v4  ;;  %v962_v8 = vld [vmem:[%s1348_s2] sm:$0xff]   ;;  %v965_v10 = vld [vmem:[%s1349_s3 + $0x8] sm:$0xff]   ;;  %v1143_v13 = vshrl.u32 %v45_v12, 7  ;;  %v967_v22 = vld [vmem:[%s1351_s4 + $0x18] sm:$0xff]   ;;  %s1059_s15 = smov 64   ;;  %vm810_vm10 = vcmask 195584  }
   0x4   :  { %915 = vmatprep.subr.bf16.mxu0 %v1053_v0  ;;  %929 = vmatprep.subr.bf16.mxu1 %v1053_v0  ;;  %v35_v9 = vld [vmem:[%s1350_s0] sm:$0xf]  ;;  %v968_v25 = vld [vmem:[%s1351_s4 + $0x10] sm:$0xff]   ;;  %v969_v26 = vld [vmem:[%s1351_s4 + $0x8] sm:$0xff]   ;;  %vm812_vm11 = vcmask 457728   ;;  %vm814_vm12 = vcmask 719872  }
   0x5   :  { %v966_v11 = vld [vmem:[%s1349_s3] sm:$0xff]   ;;  %v47_v14 = vsub.s32 0, %v1143_v13  ;;  %v136_v28 = vsub.s32 1, %v1143_v13  ;;  %v971_v37 = vld [vmem:[%s1353_s5 + $0x10] ss:$8 sps:$4 sm:$0xff]   ;;  %v218_v39 = vsub.s32 2, %v1143_v13 }
   0x6   :  { %v1149_v15 = vld [vmem:[%s1352_s8] sm:$0x3f]  ;;  %v973_v38 = vld [vmem:[%s1353_s5 + $0x14] ss:$8 sps:$4 sm:$0xff]   ;;  %v977_v58 = vld [vmem:[%s1354_s6 + $0x70] ss:$8 sps:$4 sm:$0xff]  }
   0x7   :  { %916 = vmatpush3.bf16.msra.mxu0 %v959_v3  ;;  %930 = vmatpush3.bf16.msra.mxu1 %v964_v6  ;;  %v48_v16 = vrot.slane %v1149_v15, %v47_v14  ;;  %v970_v27 = vld [vmem:[%s1351_s4] sm:$0xff]   ;;  %v137_v29 = vrot.slane %v1149_v15, %v136_v28  ;;  %v219_v40 = vrot.slane %v1149_v15, %v218_v39  ;;  %v979_v52 = vld [vmem:[%s1354_s6 + $0x74] ss:$8 sps:$4 sm:$0xff]   ;;  %v983_v63 = vld [vmem:[%s1354_s6 + $0x50] ss:$8 sps:$4 sm:$0xff]   ;;  %vm816_vm13 = vcmask 736256  }
   0x8   :  { %917 = vmatprep.subr.bf16.mxu0 %v1053_v0  ;;  %931 = vmatprep.subr.bf16.mxu1 %v1053_v0  ;;  %v976_v49 = vld [vmem:[%s1353_s5 + $0x4] ss:$8 sps:$4 sm:$0xff]   ;;  %v974_v50 = vld [vmem:[%s1353_s5] ss:$8 sps:$4 sm:$0xff]   ;;  %v985_v62 = vld [vmem:[%s1354_s6 + $0x54] ss:$8 sps:$4 sm:$0xff]  }
   0x9   :  { %v291_v54 = vld [vmem:[%s1355_s1] sm:$0xff]  ;;  %v991_v2 = vld [vmem:[%s1354_s6 + $0x34] ss:$8 sps:$4 sm:$0xff]   ;;  %v989_v3 = vld [vmem:[%s1354_s6 + $0x30] ss:$8 sps:$4 sm:$0xff]   ;;  %vm818_vm14 = vcmask 752640  }
   0xa   :  { %v982_v60 = vld [vmem:[%s1354_s6 + $0x64] ss:$8 sps:$4 sm:$0xff]   ;;  %v980_v61 = vld [vmem:[%s1354_s6 + $0x60] ss:$8 sps:$4 sm:$0xff]   ;;  %v997_v6 = vld [vmem:[%s1354_s6 + $0x14] ss:$8 sps:$4 sm:$0xff]  }
   0xb   :  { %918 = vmatpush3.bf16.msra.mxu0 %v960_v5  ;;  %932 = vmatpush3.bf16.msra.mxu1 %v965_v10  ;;  %v986_v1 = vld [vmem:[%s1354_s6 + $0x40] ss:$8 sps:$4 sm:$0xff]   ;;  %v994_v4 = vld [vmem:[%s1354_s6 + $0x24] ss:$8 sps:$4 sm:$0xff]   ;;  %v1003_v10 = vld [vmem:[%s1354_s6 + $0xb4] ss:$8 sps:$4 sm:$0xff]  }
   0xc   :  { %919 = vmatprep.subr.bf16.mxu0 %v1053_v0  ;;  %933 = vmatprep.subr.bf16.mxu1 %v1053_v0  ;;  %v992_v5 = vld [vmem:[%s1354_s6 + $0x20] ss:$8 sps:$4 sm:$0xff]   ;;  %v1006_v14 = vld [vmem:[%s1354_s6 + $0xa4] ss:$8 sps:$4 sm:$0xff]  }
   0xd   :  { %v1022_v28 = vld [vmem:[%s1356_s7 + $0x40] ss:$8 sps:$4 sm:$0xff]   ;;  %v1042_v39 = vld [vmem:[%s1356_s7 + $0xa4] ss:$8 sps:$4 sm:$0xff]  }
   0xf   :  { %920 = vmatpush3.bf16.msra.mxu0 %v961_v7  ;;  %934 = vmatpush3.bf16.msra.mxu1 %v966_v11  ;;  %v995_v7 = vld [vmem:[%s1354_s6 + $0x10] ss:$8 sps:$4 sm:$0xff]  }
  0x10   :  { %921 = vmatprep.subr.bf16.mxu0 %v1053_v0  ;;  %939 = vmatprep.subr.bf16.mxu1 %v1053_v0  ;;  %v1001_v11 = vld [vmem:[%s1354_s6 + $0xb0] ss:$8 sps:$4 sm:$0xff]  }
  0x13   :  { %922 = vmatpush3.bf16.msra.mxu0 %v962_v8  ;;  %v1000_v8 = vld [vmem:[%s1354_s6 + $0x4] ss:$8 sps:$4 sm:$0xff]  }
  0x14   :  { %354 = vmatprep.subr.bf16.mxu0 %v973_v38  ;;  %v1037_v38 = vld [vmem:[%s1356_s7 + $0xb0] ss:$8 sps:$4 sm:$0xff]  }
  0x16   :  { %924 = vmatmul.mubr.msk.bf16.vlgmr.msra.gmra.mxu0 %vm76_vm2, %v35_v9  ;;  %v998_v9 = vld [vmem:[%s1354_s6] ss:$8 sps:$4 sm:$0xff]  }
  0x17   :  { %355 = vmatpush1.bf16.msra.mxu0 %v971_v37  ;;  %374 = vmatprep.mubr.bf16.mxu0 %v1055_v51  ;;  %v1039_v37 = vld [vmem:[%s1356_s7 + $0xb4] ss:$8 sps:$4 sm:$0xff]  }
  0x18   :  { %356 = vmatprep.subr.bf16.mxu0 %v976_v49 }
  0x1b   :  { %357 = vmatpush1.bf16.msra.mxu0 %v974_v50 }
  0x1c   :  { %546 = vmatprep.subr.bf16.mxu0 %v979_v52 }
  0xd6   :  { %v118_v17 = vpop.f32.mrf.mxu0 }
  0xd7   :  { %v119_v18 = vadd.f32 %v118_v17, %v48_v16  ;;  %v1004_v16 = vld [vmem:[%s1354_s6 + $0xa0] ss:$8 sps:$4 sm:$0xff]   ;;  %v1009_v17 = vld [vmem:[%s1354_s6 + $0x94] ss:$8 sps:$4 sm:$0xff]  }
  0xd8   :  { %v925_v19 = vpop.f32.mrf.mxu0 }
  0xd9   :  { %v124_v20 = vmax.f32 %v119_v18, 0.0  ;;  %v1007_v18 = vld [vmem:[%s1354_s6 + $0x90] ss:$8 sps:$4 sm:$0xff]   ;;  %v1012_v19 = vld [vmem:[%s1354_s6 + $0x84] ss:$8 sps:$4 sm:$0xff]  }
  0xda   :  { %v121_v21 = vpop.f32.mrf.mxu0 }
  0xdb   :  { %v125_v23 = vpack.c.bf16 %v124_v20, %v124_v20  ;;  %v1010_v20 = vld [vmem:[%s1354_s6 + $0x80] ss:$8 sps:$4 sm:$0xff]   ;;  %v1013_v21 = vld [vmem:[%s1356_s7 + $0x70] ss:$8 sps:$4 sm:$0xff]  }
  0xdc   :  { %v926_v24 = vpop.f32.mrf.mxu0 }
  0xdd   :  { %936 = vmatmul.mubr.msk.bf16.vlgmr.msra.gmra.mxu1 %vm162_vm3, %v125_v23  ;;  %v1018_v23 = vld [vmem:[%s1356_s7 + $0x64] ss:$8 sps:$4 sm:$0xff]   ;;  %v1016_v24 = vld [vmem:[%s1356_s7 + $0x60] ss:$8 sps:$4 sm:$0xff]  }
  0xde   :  { %940 = vmatpush3.bf16.msra.mxu1 %v967_v22  ;;  %947 = vmatprep.mubr.msk.bf16.mxu1 %vm1054_vm1, %v1053_v0  ;;  %v1015_v22 = vld [vmem:[%s1356_s7 + $0x74] ss:$8 sps:$4 sm:$0xff]  }
  0xdf   :  { %941 = vmatprep.subr.bf16.mxu1 %v1053_v0 }
  0xe2   :  { %942 = vmatpush3.bf16.msra.mxu1 %v968_v25  ;;  %v1021_v25 = vld [vmem:[%s1356_s7 + $0x54] ss:$8 sps:$4 sm:$0xff]  }
  0xe3   :  { %943 = vmatprep.subr.bf16.mxu1 %v1053_v0 }
  0xe6   :  { %944 = vmatpush3.bf16.msra.mxu1 %v969_v26  ;;  %v1019_v26 = vld [vmem:[%s1356_s7 + $0x50] ss:$8 sps:$4 sm:$0xff]  }
  0xe7   :  { %945 = vmatprep.subr.bf16.mxu1 %v1053_v0  ;;  %v988_v0 = vld [vmem:[%s1354_s6 + $0x44] ss:$8 sps:$4 sm:$0xff]  }
  0xea   :  { %946 = vmatpush3.bf16.msra.mxu1 %v970_v27  ;;  %v1024_v27 = vld [vmem:[%s1356_s7 + $0x44] ss:$8 sps:$4 sm:$0xff]  }
  0xeb   :  { %750 = vmatprep.subr.bf16.mxu1 %v1015_v22 }
 0x19d   :  { %v200_v30 = vpop.f32.mrf.mxu1 }
 0x19e   :  { %v201_v31 = vadd.f32 %v200_v30, %v137_v29  ;;  %v1027_v29 = vld [vmem:[%s1356_s7 + $0x34] ss:$8 sps:$4 sm:$0xff]   ;;  %v1025_v30 = vld [vmem:[%s1356_s7 + $0x30] ss:$8 sps:$4 sm:$0xff]  }
 0x19f   :  { %v937_v32 = vpop.f32.mrf.mxu1 }
 0x1a0   :  { %v206_v33 = vmax.f32 %v201_v31, 0.0  ;;  %v1030_v31 = vld [vmem:[%s1356_s7 + $0x24] ss:$8 sps:$4 sm:$0xff]   ;;  %v1028_v32 = vld [vmem:[%s1356_s7 + $0x20] ss:$8 sps:$4 sm:$0xff]  }
 0x1a1   :  { %v203_v34 = vpop.f32.mrf.mxu1 }
 0x1a2   :  { %v207_v35 = vpack.c.bf16 %v206_v33, %v206_v33  ;;  %v1033_v33 = vld [vmem:[%s1356_s7 + $0x14] ss:$8 sps:$4 sm:$0xff]   ;;  %v1031_v34 = vld [vmem:[%s1356_s7 + $0x10] ss:$8 sps:$4 sm:$0xff]  }
 0x1a3   :  { %v938_v36 = vpop.f32.mrf.mxu1 }
 0x1a4   :  { %948 = vmatmul.mubr.msk.bf16.vlgmr.msra.gmra.mxu1 %vm162_vm3, %v207_v35  ;;  %v1036_v35 = vld [vmem:[%s1356_s7 + $0x4] ss:$8 sps:$4 sm:$0xff]   ;;  %v1034_v36 = vld [vmem:[%s1356_s7] ss:$8 sps:$4 sm:$0xff]  }
 0x1a5   :  { %751 = vmatpush1.bf16.msra.mxu1 %v1013_v21 }
 0x1a6   :  { %752 = vmatprep.subr.bf16.mxu1 %v1018_v23 }
 0x1a9   :  { %753 = vmatpush1.bf16.msra.mxu1 %v1016_v24 }
 0x1aa   :  { %754 = vmatprep.subr.bf16.mxu1 %v1021_v25 }
 0x1ad   :  { %755 = vmatpush1.bf16.msra.mxu1 %v1019_v26 }
 0x1ae   :  { %756 = vmatprep.subr.bf16.mxu1 %v1024_v27 }
 0x1b1   :  { %757 = vmatpush1.bf16.msra.mxu1 %v1022_v28 }
 0x1b2   :  { %758 = vmatprep.subr.bf16.mxu1 %v1027_v29 }
 0x1b5   :  { %759 = vmatpush1.bf16.msra.mxu1 %v1025_v30 }
 0x1b6   :  { %760 = vmatprep.subr.bf16.mxu1 %v1030_v31 }
 0x1b9   :  { %761 = vmatpush1.bf16.msra.mxu1 %v1028_v32 }
 0x1ba   :  { %762 = vmatprep.subr.bf16.mxu1 %v1033_v33 }
 0x1bd   :  { %763 = vmatpush1.bf16.msra.mxu1 %v1031_v34 }
 0x1be   :  { %764 = vmatprep.subr.bf16.mxu1 %v1036_v35 }
 0x1c1   :  { %765 = vmatpush1.bf16.msra.mxu1 %v1034_v36 }
 0x1c2   :  { %774 = vmatprep.subr.bf16.mxu1 %v1039_v37 }
 0x1c5   :  { %775 = vmatpush2.bf16.msra.mxu1 %v1037_v38 }
 0x1c6   :  { %776 = vmatprep.subr.bf16.mxu1 %v1042_v39 }
 0x264   :  { %v281_v41 = vpop.f32.mrf.mxu1 }
 0x265   :  { %v282_v42 = vadd.f32 %v281_v41, %v219_v40  ;;  %v1040_v40 = vld [vmem:[%s1356_s7 + $0xa0] ss:$8 sps:$4 sm:$0xff]   ;;  %v299_v41 = vand.u32 127, %v45_v12 }
 0x266   :  { %v949_v43 = vpop.f32.mrf.mxu1  ;;  %777 = vmatpush2.bf16.msra.mxu1 %v1040_v40 }
 0x267   :  { %v287_v44 = vmax.f32 %v282_v42, -30.0  ;;  %v34_v43 = vld [vmem:[%s1352_s8 + $0x8] sm:$0x3f]  ;;  %vm301_vm5 = vcmp.lt.s32.totalorder %v299_v41, 64 }
 0x268   :  { %v284_v45 = vpop.f32.mrf.mxu1 }
 0x269   :  { %v288_v46 = vmin.f32 %v287_v44, 20.0 }
 0x26a   :  { %v950_v47 = vpop.f32.mrf.mxu1 }
 0x26b   :  { %v289_v48 = vmul.f32 1.442695, %v288_v46  ;;  %v1058_v46 = vmov 0.25  }
 0x26c   :  { %v303_v47 = vsel %vm301_vm5, 0.0, %v1058_v46 }
 0x26d   :  { %1049 = vpow2.f32 %v289_v48 }
 0x27a   :  { %v1050_v53 = vpop.eup %1049 }
 0x27b   :  { %799 = vrot.lane.b32.xlu1 %v1050_v53, %s1056_s24  ;;  %293 = vrot.lane.b32.xlu0 %v1050_v53, %s1057_s25 }
 0x27f   :  { %796 = vrot.lane.b32.xlu0 %v282_v42, %s1056_s24 }
 0x2ed   :  { %v294_v55 = vpop.permute.xlu0 %293 }
 0x2ee   :  { %v296_v56 = vmul.f32 %v294_v55, %v291_v54 }
 0x2f0   :  { %v297_v57 = vadd.f32 %v296_v56, %v282_v42  ;;  %v312_v42 = vsub.s32 3, %v1143_v13 }
 0x2f1   :  { %v797_v29 = vpop.permute.xlu0 %796 }
 0x2f2   :  { %v305_v59 = vpack.c.bf16 %v297_v57, %v297_v57  ;;  %v313_v44 = vrot.slane %v1149_v15, %v312_v42  ;;  %v317_v45 = vrot.slane %v34_v43, %v312_v42 }
 0x2f4   :  { %846 = vmatmul.mubr.msk.bf16.vlgmr.msra.gmra.mxu0 %vm338_vm4, %v305_v59  ;;  %v1045_v59 = vld [vmem:[%s1356_s7 + $0x94] ss:$8 sps:$4 sm:$0xff]  }
 0x2f5   :  { %547 = vmatpush1.bf16.msra.mxu0 %v977_v58  ;;  %778 = vmatprep.subr.bf16.mxu1 %v1045_v59 }
 0x2f6   :  { %548 = vmatprep.subr.bf16.mxu0 %v982_v60  ;;  %v1043_v60 = vld [vmem:[%s1356_s7 + $0x90] ss:$8 sps:$4 sm:$0xff]  }
 0x2f7   :  { %779 = vmatpush2.bf16.msra.mxu1 %v1043_v60 }
 0x2f9   :  { %549 = vmatpush1.bf16.msra.mxu0 %v980_v61  ;;  %v1048_v61 = vld [vmem:[%s1356_s7 + $0x84] ss:$8 sps:$4 sm:$0xff]  }
 0x2fa   :  { %550 = vmatprep.subr.bf16.mxu0 %v985_v62  ;;  %v1046_v62 = vld [vmem:[%s1356_s7 + $0x80] ss:$8 sps:$4 sm:$0xff]   ;;  %780 = vmatprep.subr.bf16.mxu1 %v1048_v61 }
 0x2fb   :  { %781 = vmatpush2.bf16.msra.mxu1 %v1046_v62 }
 0x2fd   :  { %551 = vmatpush1.bf16.msra.mxu0 %v983_v63  ;;  %v417_v63 = vsub.s32 4, %v1143_v13 }
 0x2fe   :  { %552 = vmatprep.subr.bf16.mxu0 %v988_v0 }
 0x2ff   :  { %v418_v0 = vrot.slane %v1149_v15, %v417_v63 }
 0x301   :  { %553 = vmatpush1.bf16.msra.mxu0 %v986_v1  ;;  %v422_v1 = vrot.slane %v34_v43, %v417_v63 }
 0x302   :  { %554 = vmatprep.subr.bf16.mxu0 %v991_v2 }
 0x305   :  { %555 = vmatpush1.bf16.msra.mxu0 %v989_v3 }
 0x306   :  { %556 = vmatprep.subr.bf16.mxu0 %v994_v4 }
 0x309   :  { %557 = vmatpush1.bf16.msra.mxu0 %v992_v5 }
 0x30a   :  { %558 = vmatprep.subr.bf16.mxu0 %v997_v6 }
 0x30d   :  { %559 = vmatpush1.bf16.msra.mxu0 %v995_v7 }
 0x30e   :  { %560 = vmatprep.subr.bf16.mxu0 %v1000_v8 }
 0x311   :  { %561 = vmatpush1.bf16.msra.mxu0 %v998_v9 }
 0x312   :  { %570 = vmatprep.subr.bf16.mxu0 %v1003_v10 }
 0x315   :  { %571 = vmatpush2.bf16.msra.mxu0 %v1001_v11 }
 0x316   :  { %572 = vmatprep.subr.bf16.mxu0 %v1006_v14 }
 0x319   :  { %573 = vmatpush2.bf16.msra.mxu0 %v1004_v16 }
 0x31a   :  { %574 = vmatprep.subr.bf16.mxu0 %v1009_v17  ;;  %v621_v17 = vsub.s32 5, %v1143_v13 }
 0x31d   :  { %575 = vmatpush2.bf16.msra.mxu0 %v1007_v18  ;;  %v622_v18 = vrot.slane %v1149_v15, %v621_v17  ;;  %v800_v15 = vpop.permute.xlu1 %799 }
 0x31e   :  { %576 = vmatprep.subr.bf16.mxu0 %v1012_v19  ;;  %v626_v19 = vrot.slane %v34_v43, %v621_v17 }
 0x321   :  { %577 = vmatpush2.bf16.msra.mxu0 %v1010_v20 }
 0x3b4   :  { %v376_v48 = vpop.f32.mrf.mxu0 }
 0x3b5   :  { %v377_v49 = vadd.f32 %v376_v48, %v313_v44 }
 0x3b6   :  { %v378_v50 = vpop.f32.mrf.mxu0 }
 0x3b7   :  { %vm383_vm6 = vcmp.ge.f32.partialorder %v377_v49, 0.0  ;;  %v385_v51 = vmul.f32 %v377_v49, %v303_v47  ;;  %v379_v52 = vadd.f32 %v378_v50, %v317_v45 }
 0x3b8   :  { %v380_v53 = vpop.f32.mrf.mxu0 }
 0x3b9   :  { %vm384_vm7 = vcmp.ge.f32.partialorder %v379_v52, 0.0  ;;  %v386_v12 = vmul.f32 0.25, %v379_v52  ;;  %v387_v54 = vsel %vm383_vm6, %v377_v49, %v385_v51 }
 0x3ba   :  { %v381_v55 = vpop.f32.mrf.mxu0  ;;  %v389_v58 = vpack.c.bf16 %v387_v54, %v387_v54 }
 0x3bb   :  { %v388_v56 = vsel %vm384_vm7, %v379_v52, %v386_v12 }
 0x3bc   :  { %v390_v57 = vpack.c.bf16 %v388_v56, %v388_v56 }
 0x3be   :  { %871 = vmatprep.mubr.msk.bf16.mxu0 %vm162_vm3, %v390_v57 }
 0x3bf   :  { %579 = vmatmul.mubr.bf16.vlgmr.msra.gmra.mxu0 %v389_v58 }
 0x47f   :  { %v580_v2 = vpop.f32.mrf.mxu0 }
 0x480   :  { %v581_v3 = vadd.f32 %v580_v2, %v418_v0 }
 0x481   :  { %v582_v4 = vpop.f32.mrf.mxu0 }
 0x482   :  { %vm587_vm8 = vcmp.ge.f32.partialorder %v581_v3, 0.0  ;;  %v589_v5 = vmul.f32 %v581_v3, %v303_v47  ;;  %v583_v6 = vadd.f32 %v582_v4, %v422_v1 }
 0x483   :  { %v584_v7 = vpop.f32.mrf.mxu0 }
 0x484   :  { %vm588_vm9 = vcmp.ge.f32.partialorder %v583_v6, 0.0  ;;  %v590_v8 = vmul.f32 0.25, %v583_v6  ;;  %v591_v9 = vsel %vm587_vm8, %v581_v3, %v589_v5 }
 0x485   :  { %v585_v10 = vpop.f32.mrf.mxu0  ;;  %v593_v16 = vpack.c.bf16 %v591_v9, %v591_v9 }
 0x486   :  { %v592_v11 = vsel %vm588_vm9, %v583_v6, %v590_v8 }
 0x487   :  { %v594_v14 = vpack.c.bf16 %v592_v11, %v592_v11 }
 0x489   :  { %896 = vmatprep.mubr.msk.bf16.mxu1 %vm162_vm3, %v594_v14 }
 0x48a   :  { %783 = vmatmul.mubr.bf16.vlgmr.msra.gmra.mxu1 %v593_v16 }
 0x54a   :  { %v784_v20 = vpop.f32.mrf.mxu1 }
 0x54b   :  { %v785_v21 = vadd.f32 %v784_v20, %v622_v18 }
 0x54c   :  { %v786_v22 = vpop.f32.mrf.mxu1 }
 0x54d   :  { %820 = vst [vmem:[%s1357_s9] sm:$0xff] %v785_v21  ;;  %v787_v23 = vadd.f32 %v786_v22, %v626_v19 }
 0x54e   :  { %v788_v24 = vpop.f32.mrf.mxu1 }
 0x54f   :  { %v791_v25 = vmax.f32 %v787_v23, -20.0  ;;  %803 = vrot.lane.b32.xlu1 %v787_v23, %s1059_s15  ;;  %v811_v30 = vsel %vm810_vm10, %v787_v23, %v797_v29 }
 0x550   :  { %v789_v26 = vpop.f32.mrf.mxu1  ;;  %v813_v32 = vsel %vm812_vm11, %v811_v30, %v800_v15 }
 0x551   :  { %v792_v27 = vmin.f32 %v791_v25, 30.0 }
 0x553   :  { %v793_v28 = vmul.f32 1.442695, %v792_v27 }
 0x555   :  { %1051 = vpow2.f32 %v793_v28 }
 0x562   :  { %v1052_v13 = vpop.eup %1051 }
 0x563   :  { %807 = vrot.lane.b32.xlu0 %v1052_v13, %s1059_s15 }
 0x5c1   :  { %v804_v31 = vpop.permute.xlu1 %803 }
 0x5c2   :  { %v815_v33 = vsel %vm814_vm12, %v813_v32, %v804_v31 }
 0x5d5   :  { %v808_v34 = vpop.permute.xlu0 %807 }
 0x5d6   :  { %v817_v35 = vsel %vm816_vm13, %v815_v33, %v808_v34 }
 0x5d7   :  { %v819_v36 = vsel %vm818_vm14, %v817_v35, 0.0 }
 0x5d8   :  { %821 = vst [vmem:[%s1357_s9 + $0x8] sm:$0xff] %v819_v36 }

</bundles_post_ra>
